<compile_context>
chip_gen: v7x
topology: tpu7x:2x2x1
jax: 0.10.0
libtpu: 0.0.40
codegen_flags: <defaults>
</compile_context>

<pallas_src>
import jax
import jax.numpy as jnp
from jax import lax
from jax.experimental import pallas as pl
from jax.experimental.pallas import tpu as pltpu

DEFAULT_COEF = 0.97


def _round_up(x: int, m: int) -> int:
    return ((x + m - 1) // m) * m


def _make_preemphasis_kernel(coef: float):
    coef = float(coef)

    def kernel(x_ref, o_ref, carry_ref):
        j = pl.program_id(1)          # time-tile index (innermost, sequential)
        x = x_ref[...]                # (TB, TT) tile in VMEM

        # rolled[:, t] = x[:, t-1] for t >= 1; rolled[:, 0] = x[:, -1] (wrong,
        # fixed below).  XLU rotation -> co-issues with the load/store stream.
        rolled = pltpu.roll(x, shift=1, axis=1)

        # Lane 0's "previous sample": reflect padding (x[:, 1]) on the first
        # time tile, else the halo carried from the previous time tile.
        first_prev = jnp.where(j == 0, x[:, 1:2], carry_ref[...])   # (TB, 1)

        lane = lax.broadcasted_iota(jnp.int32, x.shape, dimension=1)
        prev = jnp.where(lane == 0, first_prev, rolled)

        # Single unmasked, lane-dense full-tile store.
        o_ref[...] = x - coef * prev

        # Carry this tile's last sample into the next time tile.  On the last
        # (possibly ragged) time tile this may read block padding, but it is
        # never consumed: the next batch tile restarts at j == 0 (reflect).
        carry_ref[...] = x[:, -1:]

    return kernel


def pre_emphasis(x: jax.Array, coef: float = DEFAULT_COEF, *,
                 tb_cap: int = 256, tt_cap: int = 2048,
                 donate_input: bool = False) -> jax.Array:
    """y[:, t] = x[:, t] - coef * x[:, t-1], with reflect padding at t == 0.

    Matches `F.conv1d(F.pad(x[:, None], (1, 0), 'reflect'), [[-coef, 1.0]])`.
    """
    assert x.ndim == 2, "The number of dimensions of input tensor must be 2!"
    B, T = x.shape
    assert T >= 2, "need at least 2 samples for reflect padding"

    # Lane-dense fixed tiles; the cdiv grid masks the ragged edges.
    TT = min(tt_cap, _round_up(T, 128))        # lane tile (multiple of 128)
    TB = min(tb_cap, _round_up(B, 8))          # sublane tile (multiple of 8)
    # v7x megacore: keep >= 2 batch tiles whenever B allows so the "parallel"
    # batch axis shards the HBM stream across both TensorCores.
    if pl.cdiv(B, TB) < 2 and B > 8:
        TB = max(8, (B // 2 // 8) * 8)

    grid = (pl.cdiv(B, TB), pl.cdiv(T, TT))

    # In + out, double-buffered, plus halo scratch and slack; explicit so the
    # config is safe under v5e's 16 MiB default scoped VMEM and v7x's 64 MiB
    # physical VMEM alike.
    tile_bytes = TB * TT * jnp.dtype(x.dtype).itemsize
    vmem_limit = int(max(32 << 20, 4 * tile_bytes + (2 << 20)))

    kernel = _make_preemphasis_kernel(coef)

    return pl.pallas_call(
        kernel,
        out_shape=jax.ShapeDtypeStruct((B, T), x.dtype),
        grid_spec=pltpu.PrefetchScalarGridSpec(
            num_scalar_prefetch=0,
            grid=grid,
            in_specs=[pl.BlockSpec((TB, TT), lambda i, j: (i, j))],
            out_specs=pl.BlockSpec((TB, TT), lambda i, j: (i, j)),
            scratch_shapes=[pltpu.VMEM((TB, 1), x.dtype)],   # halo carry column
        ),
        compiler_params=pltpu.CompilerParams(
            # Batch tiles are independent -> "parallel" (v7x megacore).
            # Time tiles carry the halo -> MUST stay innermost + "arbitrary".
            dimension_semantics=("parallel", "arbitrary"),
            vmem_limit_bytes=vmem_limit,
        ),
        # Footprint/latency win when the caller actually donates x.
        input_output_aliases={0: 0} if donate_input else {},
    )(x)


def _reference(x: jax.Array, coef: float = DEFAULT_COEF) -> jax.Array:
    prev = jnp.concatenate([x[:, 1:2], x[:, :-1]], axis=1)  # reflect-padded x[t-1]
    return x - coef * prev


if __name__ == "__main__":
    key = jax.random.PRNGKey(0)
    k1, k2, k3 = jax.random.split(key, 3)

    # Case 1: multi-tile grid (2 batch tiles x 4 time tiles) -> exercises the
    # carried halo and the parallel batch axis.
    x1 = jax.random.normal(k1, (16, 512), dtype=jnp.float32)
    y1 = jax.block_until_ready(pre_emphasis(x1, tb_cap=8, tt_cap=128))
    assert jnp.allclose(y1, _reference(x1), atol=1e-6, rtol=1e-6), "mismatch (tiled)"

    # Case 2: ragged shapes (B=6 not a multiple of 8, T=300 not a multiple of
    # 128) -> cdiv grid with masked edges; last time tile is ragged.
    x2 = jax.random.normal(k2, (6, 300), dtype=jnp.float32)
    y2 = jax.block_until_ready(pre_emphasis(x2, tt_cap=128))
    assert jnp.allclose(y2, _reference(x2), atol=1e-6, rtol=1e-6), "mismatch (ragged)"

    # Case 3: default tile caps, single tile covering the whole (small) array.
    x3 = jax.random.normal(k3, (4, 256), dtype=jnp.float32)
    y3 = jax.block_until_ready(pre_emphasis(x3))
    assert jnp.allclose(y3, _reference(x3), atol=1e-6, rtol=1e-6), "mismatch (single)"

    print("KERNEL_OK")
</pallas_src>

<mosaic_0001>
module attributes {stable_mosaic.version = 11 : i64} {
  func.func @kernel(%arg0: i32, %arg1: i32, %arg2: memref<8x128xf32, #tpu.memory_space<vmem>>, %arg3: memref<8x128xf32, #tpu.memory_space<vmem>>, %arg4: memref<8x1xf32, #tpu.memory_space<vmem>>) attributes {dimension_semantics = [#tpu.dimension_semantics<parallel>, #tpu.dimension_semantics<arbitrary>], iteration_bounds = array<i64: 2, 4>, scalar_prefetch = 0 : i64, scratch_operands = 1 : i64, tpu.core_type = #tpu.core_type<tc>, window_params = [{transform_indices = @transform_0, window_bounds = array<i64: 8, 128>}, {transform_indices = @transform_1, window_bounds = array<i64: 8, 128>}]} {
    %c0 = arith.constant 0 : index
    %c0_0 = arith.constant 0 : index
    %0 = vector.load %arg2[%c0, %c0_0] : memref<8x128xf32, #tpu.memory_space<vmem>>, vector<8x128xf32>
    %c1_i32 = arith.constant 1 : i32
    %1 = tpu.dynamic_rotate %0 by %c1_i32 dim 1 : vector<8x128xf32>, i32 -> vector<8x128xf32>
    %c0_i32 = arith.constant 0 : i32
    %2 = arith.cmpi eq, %arg1, %c0_i32 : i32
    %3 = vector.extract_strided_slice %0 {offsets = [0, 1], sizes = [8, 1], strides = [1, 1]} : vector<8x128xf32> to vector<8x1xf32>
    %c0_1 = arith.constant 0 : index
    %c0_2 = arith.constant 0 : index
    %4 = vector.load %arg4[%c0_1, %c0_2] : memref<8x1xf32, #tpu.memory_space<vmem>>, vector<8x1xf32>
    %5 = arith.select %2, %3, %4 : vector<8x1xf32>
    %6 = tpu.iota {dimensions = array<i32: 1>} : vector<8x128xi32>
    %c0_i32_3 = arith.constant 0 : i32
    %7 = vector.broadcast %c0_i32_3 : i32 to vector<8x128xi32>
    %8 = arith.cmpi eq, %6, %7 : vector<8x128xi32>
    %9 = vector.shape_cast %5 : vector<8x1xf32> to vector<8x1xf32>
    %10 = vector.broadcast %9 : vector<8x1xf32> to vector<8x128xf32>
    %11 = arith.select %8, %10, %1 : vector<8x128xi1>, vector<8x128xf32>
    %cst = arith.constant 9.700000e-01 : f32
    %12 = vector.broadcast %cst : f32 to vector<8x128xf32>
    %13 = arith.mulf %12, %11 : vector<8x128xf32>
    %14 = arith.subf %0, %13 : vector<8x128xf32>
    %c0_4 = arith.constant 0 : index
    %c0_5 = arith.constant 0 : index
    %15 = vector.load %arg3[%c0_4, %c0_5] : memref<8x128xf32, #tpu.memory_space<vmem>>, vector<8x128xf32>
    tpu.vector_store %arg3[%c0_4, %c0_5], %14 {strides = array<i32>} : memref<8x128xf32, #tpu.memory_space<vmem>>, vector<8x128xf32>,
    %16 = vector.extract_strided_slice %0 {offsets = [0, 127], sizes = [8, 1], strides = [1, 1]} : vector<8x128xf32> to vector<8x1xf32>
    %c0_6 = arith.constant 0 : index
    %c0_7 = arith.constant 0 : index
    %17 = vector.load %arg4[%c0_6, %c0_7] : memref<8x1xf32, #tpu.memory_space<vmem>>, vector<8x1xf32>
    tpu.vector_store %arg4[%c0_6, %c0_7], %16 {strides = array<i32>} : memref<8x1xf32, #tpu.memory_space<vmem>>, vector<8x1xf32>,
    return
  }
  func.func @transform_0(%arg0: i32, %arg1: i32) -> (i32, i32) {
    %c0_i32 = arith.constant 0 : i32
    return %arg0, %arg1 : i32, i32
  }
  func.func @transform_1(%arg0: i32, %arg1: i32) -> (i32, i32) {
    %c0_i32 = arith.constant 0 : i32
    return %arg0, %arg1 : i32, i32
  }
}

</mosaic_0001>

<bundles_post_ra>
// kernel: tpu_custom_call.1
= control target key start
LH: loop header
LB: loop body
LE: loop exit
PB: predicated region body
PF: predicated region fallthrough
CT: control target
= control target key end

     0   :  { %6 = vsyncpa [#allocation4], 0  ;;  %s721_s0 = inlined_call_operand.hbm [shape: f32[16,512], index: 0, kind: input, shape index: {}]   ;;  %s722_s1 = inlined_call_operand.hbm [shape: f32[16,512], index: 1, kind: output, shape index: {}]  }
   0x1   :  { %8 = vsyncpa [#allocation4 + $0x1], 0 }
   0x2   :  { %9 = vsyncpa [#allocation5], 0 }
   0x3   :  { %11 = vsyncpa [#allocation5 + $0x1], 0  ;;  %s522_s6 = smov 0   ;;  %s524_s7 = smov 0  }
   0x4   :  { %s526_s8 = smov 0   ;;  %s528_s9 = smov 0  }
   0x5   :  { %s530_s10 = smov 0   ;;  %s532_s11 = smov 0  }
   0x6   :  { %s534_s12 = smov 0   ;;  %s536_s13 = smov 0  }
   0x7 LB: > { %s282_s14 = sadd.s32 4294967295, %s506_s13   ;;  %s283_s15 = sadd.s32 4294967294, %s506_s13   ;;  %s506_s13 = sphi %s536_s13, %s17_s13   ;;  %s502_s12 = sphi %s534_s12, %s739_s12   ;;  %s498_s11 = sphi %s532_s11, %s738_s11   ;;  %s494_s10 = sphi %s530_s10, %s737_s10   ;;  %s490_s9 = sphi %s528_s9, %s736_s9   ;;  %s486_s8 = sphi %s526_s8, %s735_s8   ;;  %s482_s7 = sphi %s524_s7, %s734_s7   ;;  %s478_s6 = sphi %s522_s6, %s733_s6  }
   0x8   : > { %s26_s16 = sadd.s32 1, %s498_s11  ;;  %s29_s17 = sadd.s32 1, %s502_s12 }
   0x9   : > { %p27_p0 = scmp.ge.s32.totalorder %s26_s16, 4  ;;  %s38_s18 = sadd.s32 1, %s486_s8 }
   0xa   : > { %p45_p1 = scmp.ne.s32.totalorder %s486_s8, %s482_s7  ;;  %p46_p2 = scmp.eq.s32.totalorder %s506_s13, 0 }
   0xb   : > { %s741_s16 = smov (%p27_p0, %s26_s16), 0  ;;  %s743_s17 = smov (!%p27_p0, %s29_s17), %s502_s12 }
   0xc   : > { %s34_s19 = ssub.s32 %s498_s11, %s741_s16  ;;  %p575_p3 = por %p46_p2, %p45_p1 }
   0xd   : > { %p31_p4 = scmp.ge.s32.totalorder %s743_s17, 2  ;;  %p51_p5 = scmp.ne.s32.totalorder %s482_s7, %s478_s6 }
   0xe   : > { %p52_p6 = scmp.eq.s32.totalorder %s282_s14, 0  ;;  %p77_p7 = scmp.eq.s32.totalorder %s282_s14, 7 }
   0xf   : > { %s745_s17 = smov (%p31_p4, %s743_s17), 0  ;;  %p83_p10 = scmp.eq.s32.totalorder %s283_s15, 7 }
  0x10   : > { %p583_p8 = por %p52_p6, %p51_p5  ;;  %p587_p9 = por %p77_p7, %p45_p1 }
  0x11   : > { %s33_s23 = ssub.s32 %s502_s12, %s745_s17  ;;  %p593_p12 = por %p83_p10, %p51_p5 }
  0x12   : > { %s726_s22 = scalar_select %p587_p9, 1, 0 }
  0x13   : > { %s35_s24 = sor.u32 %s34_s19, %s33_s23  ;;  %p309_p13 = scmp.lt.s32.totalorder %s506_s13, 8 }
  0x14   : > { %p36_p11 = scmp.eq.s32.totalorder %s35_s24, 0  ;;  %s103_s26 = sand.u32 1, %s486_s8  }
  0x15   : > { %s727_s25 = scalar_select %p593_p12, 1, 0 }
  0x16   : > { %s600_s27 = scalar_select %p36_p11, %s486_s8, %s38_s18  }
  0x17   : > { %s286_s28 = sshll.u32 %s103_s26, 3  ;;  %s287_s29 = sshll.u32 %s502_s12, 2 }
  0x18   : > { %s112_s30 = sadd.s32 %s498_s11, %s287_s29  ;;  %s107_s2 = scalar_lea.vmem [#allocation3], %s286_s28 }
  0x19   : > { %s116_s3 = sshll.u32 %s107_s2, 4  ;;  %s288_s4 = sshll.u32 %s112_s30, 7  ;;  %s604_s3 = int_to_ptr.vmem [resolvable:$true] %s116_s3 }
  0x1a   : > { %s609_s15 = scalar_lea.hbm %s721_s0, %s288_s4  ;;  %p613_p0 = pnand %p309_p13, %p575_p3 }
  0x1b   : > { %s104_s19 = scalar_lea.sflag [#allocation4], %s103_s26  ;;  %s378_s23 = scalar_lea.hbm %s609_s15, 128 }
  0x1c   : > { %p379_p4 = scmp.ne.s32.totalorder %s609_s15, %s378_s23  ;;  %p380_p5 = pneg %p613_p0 }
  0x1d   : > { %s383_s28 = scalar_lea.hbm %s721_s0, 1024  ;;  %p384_p3 = scmp.lt.u32.totalorder %s609_s15, %s721_s0 }
  0x1e   : > { %p381_p6 = pnand %p380_p5, %p379_p4  ;;  %p385_p10 = scmp.lt.u32.totalorder %s383_s28, %s378_s23 }
  0x1f   : > { %p387_p13 = scmp.lt.u32.totalorder %s378_s23, %s609_s15 }
  0x20   : > { %p382_p7 = pneg %p381_p6  ;;  %p386_p11 = por %p385_p10, %p384_p3 }
  0x22   : > { %p388_p1 = por %p387_p13, %p386_p11 }
  0x24   : > { %p389_p2 = pnand %p388_p1, %p382_p7 }
  0x26   : > { %392 = shalt.err (!%p389_p2)
}
  0x27   : > { %s393_s26 = scalar_lea.vmem %s604_s3, 128  ;;  %s508_s2 = smov [#allocation3]  }
  0x28   : > { %p394_p4 = scmp.ne.s32.totalorder %s604_s3, %s393_s26  ;;  %s398_s4 = sshll.u32 %s508_s2, 4  ;;  %s399_s4 = int_to_ptr.vmem [resolvable:$false] %s398_s4 }
  0x29   : > { %s400_s5 = scalar_lea.vmem %s399_s4, 256  ;;  %p401_p9 = scmp.lt.s32.totalorder %s604_s3, %s399_s4 }
  0x2a   : > { %p396_p6 = pnand %p394_p4, %p380_p5  ;;  %p402_p3 = scmp.lt.s32.totalorder %s400_s5, %s393_s26 }
  0x2c   : > { %p397_p12 = pneg %p396_p6  ;;  %p403_p10 = por %p402_p3, %p401_p9 }
  0x2e   : > { %p404_p11 = pnand %p403_p10, %p397_p12 }
  0x30   : > { %407 = shalt.err (!%p404_p11)
}
  0x31   : > { %304 = dma.hbm_to_vmem [thread:$0]  (!%p613_p0), %s609_s15, 128, %s604_s3, %s104_s19  }
  0x32   : > { %p729_p1 = scmp.lt.s32.totalorder %s506_s13, 9  ;;  %p730_p2 = scmp.ge.s32.totalorder %s506_s13, 1 }
  0x34   : > { %p122_p5 = pnand %p730_p2, %p729_p1 }
  0x35   : > { %s649_s14 = sand.u32 (!%p122_p5), 1, %s482_s7  }
  0x36   : > { %125 = sbr.rel (%p122_p5) target bundleno = 327 (0x147), region = 24  ;;  %s290_s23 = sshll.u32 (!%p122_p5), %s649_s14, 3 }
  0x37   : > { %s128_s20 = scalar_lea.sflag (!%p122_p5), [#allocation4], %s649_s14  ;;  %s131_s18 = scalar_lea.vmem (!%p122_p5), [#allocation3], %s290_s23 }
  0x3d   : > { %469 = dma.done.wait (%p583_p8), %s128_s20, 128  }
  0x3e   : > { %471 = vsyncadd (%p583_p8), %s128_s20, 4294967168  ;;  %v509_v0 = vmov 1   ;;  %v154_v1 = vld [vmem:[#allocation2] sm:$0xff]  ;;  %v150_v2 = vld [vmem:[%s131_s18] sm:$0xff]  ;;  %s510_s3 = smov 1   ;;  %p153_p9 = scmp.eq.s32.totalorder %s490_s9, 0  ;;  %v163_v8 = vlaneseq }
  0x3f   : > { %377 = vset.pattern.permute.xlu0 %v509_v0  ;;  %151 = vrot.lane.b32.xlu1 %v150_v2, %s510_s3  ;;  %vm179_vm1 = vcmask 7168   ;;  %s293_s21 = sshll.u32 %s494_s10, 2  ;;  %s149_s28 = scalar_lea.vmem [#allocation6], %s290_s23 }
  0x40   : > { %159 = vrot.lane.b32.xlu0 %v154_v1, %s510_s3  ;;  %s155_s15 = scalar_select %p153_p9, 1, 0  ;;  %v164_v9 = vand.u32 127, %v163_v8 }
  0x41   : > { %s193_s19 = sadd.s32 %s490_s9, %s293_s21  ;;  %s197_s29 = sshll.u32 %s149_s28, 4  ;;  %s669_s29 = int_to_ptr.vmem [resolvable:$true] %s197_s29 }
  0x42   : > { %v156_v3 = vstv %s155_s15  ;;  %vm165_vm2 = vcmp.eq.s32.totalorder %v164_v9, 0  ;;  %s294_s24 = sshll.u32 %s193_s19, 7  ;;  %s182_s9 = scalar_lea.sflag [#allocation5], %s649_s14 }
  0x43   : > { %176 = vrot.lane.b32.xlu1 %v150_v2, %s510_s3  ;;  %vm157_vm0 = vcmp.eq.s32.totalorder %v156_v3, 1  ;;  %s667_s2 = scalar_lea.hbm %s722_s1, %s294_s24  ;;  %s408_s10 = scalar_lea.vmem %s669_s29, 128 }
  0x44   : > { %p409_p8 = scmp.ne.s32.totalorder %s669_s29, %s408_s10  ;;  %p731_p12 = scmp.ne.s32.totalorder %s726_s22, 0 }
  0x45   : > { %s511_s4 = smov [#allocation6]  }
  0x46   : > { %p410_p0 = pnand %p409_p8, %p731_p12  ;;  %s412_s5 = sshll.u32 %s511_s4, 4  ;;  %s413_s5 = int_to_ptr.vmem [resolvable:$false] %s412_s5 }
  0x47   : > { %s414_s23 = scalar_lea.vmem %s413_s5, 256  ;;  %p415_p13 = scmp.lt.s32.totalorder %s669_s29, %s413_s5 }
  0x48   : > { %p411_p7 = pneg %p410_p0  ;;  %p416_p4 = scmp.lt.s32.totalorder %s414_s23, %s408_s10 }
  0x4a   : > { %p417_p6 = por %p416_p4, %p415_p13 }
  0x4c   : > { %p418_p3 = pnand %p417_p6, %p411_p7 }
  0xb1   : > { %v152_v6 = vpop.permute.xlu1 %151 }
  0xb2   : > { %v160_v4 = vpop.permute.xlu0 %159 }
  0xb3   : > { %v162_v5 = vsel %vm157_vm0, %v150_v2, %v160_v4 }
  0xb4   : > { %168 = vperm.xlu0 %377, %v162_v5  }
  0xb5   : > { %v177_v7 = vpop.permute.xlu1 %176 }
  0xb6   : > { %180 = vst.msk [vmem:[#allocation2] sm:$0xff] %vm179_vm1, %v177_v7 }
 0x133   : > { %v169_v10 = vpop.permute.xlu0 %168 }
 0x134   : > { %v171_v11 = vsel %vm165_vm2, %v169_v10, %v152_v6 }
 0x135   : > { %v172_v12 = vmul.f32 0.97, %v171_v11 }
 0x137   : > { %v173_v13 = vsub.f32 %v150_v2, %v172_v12 }
 0x139   : > { %174 = vst [vmem:[%s149_s28] sm:$0xff] %v173_v13 }
 0x13a   : > { %421 = shalt.err (!%p418_p3)
}
 0x13b   : > { %s422_s14 = scalar_lea.hbm %s667_s2, 128  ;;  %s426_s3 = scalar_lea.hbm %s722_s1, 1024 }
 0x13c   : > { %p423_p10 = scmp.ne.s32.totalorder %s667_s2, %s422_s14  ;;  %p427_p2 = scmp.lt.u32.totalorder %s667_s2, %s722_s1 }
 0x13d   : > { %p428_p5 = scmp.lt.u32.totalorder %s426_s3, %s422_s14  ;;  %p430_p8 = scmp.lt.u32.totalorder %s422_s14, %s667_s2 }
 0x13e   : > { %p424_p11 = pnand %p423_p10, %p731_p12 }
 0x13f   : > { %p429_p9 = por %p428_p5, %p427_p2 }
 0x140   : > { %p425_p1 = pneg %p424_p11 }
 0x141   : > { %p431_p0 = por %p430_p8, %p429_p9 }
 0x143   : > { %p432_p7 = pnand %p431_p0, %p425_p1 }
 0x145   : > { %435 = shalt.err (!%p432_p7)
}
 0x146   : > { %299 = dma.vmem_to_hbm [thread:$0]  (%p731_p12), %s669_s29, 128, %s667_s2, %s182_s9  }
 0x147 PF: > { %p310_p13 = scmp.ge.s32.totalorder %s506_s13, 2  ;;  %s209_s19 = sand.u32 1, %s478_s6  }
 0x148   : > { %p732_p4 = scmp.ne.s32.totalorder %s727_s25, 0  ;;  %s210_s24 = scalar_lea.sflag [#allocation5], %s209_s19 }
 0x14a   : > { %p306_p6 = pnand %p310_p13, %p732_p4 }
 0x14c   : > { %473 = dma.done.wait (!%p306_p6), %s210_s24, 128  }
 0x14d   : > { %475 = vsyncadd (!%p306_p6), %s210_s24, 4294967168  ;;  %s17_s13 = sadd.s32 1, %s506_s13   ;;  %s733_s6 = smov %s482_s7 }
 0x14e   : > { %p14_p3 = scmp.ge.s32.totalorder %s17_s13, 10   ;;  %s734_s7 = smov %s486_s8 }
 0x14f   : > { %s735_s8 = smov %s600_s27  ;;  %s736_s9 = smov %s498_s11 }
 0x150   : > { %s737_s10 = smov %s502_s12  ;;  %s738_s11 = smov %s741_s16 }
 0x151   : > { %s739_s12 = smov %s745_s17  ;;  %16 = sbr.rel (!%p14_p3) target bundleno = 7 (0x7), region = 69 }
 0x158   :  { %215 = vsyncpa [#allocation4], 1 }
 0x159   :  { %217 = vsyncpa [#allocation4 + $0x1], 1 }
 0x15a   :  { %218 = vsyncpa [#allocation5], 1 }
 0x15b   :  { %220 = vsyncpa [#allocation5 + $0x1], 1 }

</bundles_post_ra>
